<compile_context>
chip_gen: v7x
topology: tpu7x:2x2x1
jax: 0.10.0
libtpu: 0.0.40
codegen_flags: <defaults>
</compile_context>

<pallas_src>
import jax
import jax.numpy as jnp
from jax.experimental import pallas as pl
from jax.experimental.pallas import tpu as pltpu


LANE = 128        # TPU lane width; output head padded to a multiple of this
NEG_BIG = -1e30   # f32 bias for padded logit lanes -> exp underflows to exactly 0


def _deephit_kernel(x_ref, w1_ref, b1_ref, w2_ref, b2_ref,
                    w3c_ref, w3x_ref, b3_ref, w4_ref, b4_ref, o_ref):
    """Fused DeepHit forward for one batch tile.

    x_ref : (TB, F) bf16   last measurement (t=0) per sample
    w*    : bf16 matmul weights, b* : f32 biases (accumulation stays f32)
    o_ref : (TB, o_pad) bf16 softmax probabilities (pad lanes are exactly 0)
    """
    x = x_ref[...]                                               # (TB, F) bf16

    # encoder: two Linear + ReLU layers -> context vector (f32 accumulation)
    h = jnp.dot(x, w1_ref[...], preferred_element_type=jnp.float32) + b1_ref[...]
    h = jnp.maximum(h, 0.0)
    ctx = jnp.dot(h.astype(jnp.bfloat16), w2_ref[...],
                  preferred_element_type=jnp.float32) + b2_ref[...]
    ctx = jnp.maximum(ctx, 0.0)

    # causes network on [ctx, x]: un-fused (no lane-axis concat)
    z = (jnp.dot(ctx.astype(jnp.bfloat16), w3c_ref[...],
                 preferred_element_type=jnp.float32)
         + jnp.dot(x, w3x_ref[...], preferred_element_type=jnp.float32)
         + b3_ref[...])
    z = jnp.maximum(z, 0.0)

    # output head; padded lanes carry f32 bias NEG_BIG so exp() == 0 there
    logits = jnp.dot(z.astype(jnp.bfloat16), w4_ref[...],
                     preferred_element_type=jnp.float32) + b4_ref[...]

    # numerically-stable softmax over the lane-dense output axis
    m = jnp.max(logits, axis=-1, keepdims=True)
    e = jnp.exp(logits - m)
    s = jnp.sum(e, axis=-1, keepdims=True)
    o_ref[...] = (e * pl.reciprocal(s, approx=True)).astype(o_ref.dtype)


def prepare_params(raw_params):
    """Pad the head to a lane-dense width and cast matmul operands to bf16.

    Biases stay f32 (NEG_BIG pad bias in particular MUST remain f32 so the
    padded-lane logits stay finite and exp() to exactly 0)."""
    w1, b1, w2, b2, w3c, w3x, b3, w4, b4 = raw_params
    H, O = w4.shape
    o_pad = ((O + LANE - 1) // LANE) * LANE

    w4p = jnp.zeros((H, o_pad), jnp.float32).at[:, :O].set(w4)       # zero pad cols
    b4p = jnp.full((1, o_pad), NEG_BIG, jnp.float32).at[:, :O].set(b4)  # keep f32

    return {
        "w1": w1.astype(jnp.bfloat16), "b1": b1.astype(jnp.float32),
        "w2": w2.astype(jnp.bfloat16), "b2": b2.astype(jnp.float32),
        "w3c": w3c.astype(jnp.bfloat16), "w3x": w3x.astype(jnp.bfloat16),
        "b3": b3.astype(jnp.float32),
        "w4": w4p.astype(jnp.bfloat16), "b4": b4p,
        "out_size": O, "out_pad": o_pad,
    }


def deephit_forward(prepared, input_batch, time_to_event_batch, *, batch_tile=1024):
    # time_to_event_batch never influences the reference module's output.
    del time_to_event_batch
    p = prepared
    B, T, F = input_batch.shape
    o_pad, O = p["out_pad"], p["out_size"]

    # t=0 gather + bf16 cast once in the wrapper: contiguous (B, F) slab.
    x0 = input_batch[:, 0, :].astype(jnp.bfloat16)

    # Tile selection: big tiles (grid-step overhead dominates at small tiles),
    # capped well under v7x's scoped-VMEM default, >=2 tiles for large batches
    # so the ("parallel",) axis shards across both v7x TensorCores.
    tb = min(batch_tile, B, 4096)
    if B <= batch_tile and B >= 256:
        tb = pl.cdiv(B, 2)
    tb = max(8, ((tb + 7) // 8) * 8)
    n_tiles = pl.cdiv(B, tb)
    b_pad = n_tiles * tb
    if b_pad != B:
        # pad only the small (B, F) bf16 slab, never the full (B, T, F) input
        x0 = jnp.pad(x0, ((0, b_pad - B), (0, 0)))

    weights = (p["w1"], p["b1"], p["w2"], p["b2"],
               p["w3c"], p["w3x"], p["b3"], p["w4"], p["b4"])

    def resident_spec(shape):
        # full-array block, same block every grid step -> stays VMEM-resident
        return pl.BlockSpec(shape, lambda i: (0,) * len(shape))

    out = pl.pallas_call(
        _deephit_kernel,
        out_shape=jax.ShapeDtypeStruct((b_pad, o_pad), jnp.bfloat16),
        grid=(n_tiles,),
        in_specs=[
            pl.BlockSpec((tb, F), lambda i: (i, 0)),       # pipelined activations
            *[resident_spec(w.shape) for w in weights],
        ],
        out_specs=pl.BlockSpec((tb, o_pad), lambda i: (i, 0)),
        compiler_params=pltpu.CompilerParams(
            dimension_semantics=("parallel",)),
    )(x0, *weights)

    # Strip batch pad and the zero-probability lane padding.
    # TODO(synk): if downstream can consume the padded (b_pad, o_pad) bf16
    # layout directly, drop this slice to save one small HBM pass.
    return out[:B, :O]


def init_raw_params(key, input_size, hidden_size, output_size):
    ks = jax.random.split(key, 9)
    scale = 0.1
    w1 = scale * jax.random.normal(ks[0], (input_size, hidden_size), jnp.float32)
    b1 = scale * jax.random.normal(ks[1], (1, hidden_size), jnp.float32)
    w2 = scale * jax.random.normal(ks[2], (hidden_size, hidden_size), jnp.float32)
    b2 = scale * jax.random.normal(ks[3], (1, hidden_size), jnp.float32)
    w3c = scale * jax.random.normal(ks[4], (hidden_size, hidden_size), jnp.float32)
    w3x = scale * jax.random.normal(ks[5], (input_size, hidden_size), jnp.float32)
    b3 = scale * jax.random.normal(ks[6], (1, hidden_size), jnp.float32)
    w4 = scale * jax.random.normal(ks[7], (hidden_size, output_size), jnp.float32)
    b4 = scale * jax.random.normal(ks[8], (1, output_size), jnp.float32)
    return (w1, b1, w2, b2, w3c, w3x, b3, w4, b4)


def reference_forward(raw_params, input_batch, time_to_event_batch):
    del time_to_event_batch
    w1, b1, w2, b2, w3c, w3x, b3, w4, b4 = raw_params
    x = input_batch[:, 0, :].astype(jnp.float32)
    h = jax.nn.relu(x @ w1 + b1)
    ctx = jax.nn.relu(h @ w2 + b2)
    z = jax.nn.relu(ctx @ w3c + x @ w3x + b3)
    return jax.nn.softmax(z @ w4 + b4, axis=-1)


if __name__ == "__main__":
    key = jax.random.PRNGKey(0)
    k_params, k_x, k_tte = jax.random.split(key, 3)

    B, T, F = 8, 8, 16      # batch, time steps, encoder.input_size
    H = 32                  # hidden / context size
    O = 10                  # causess.output_size (e.g. 2 causes x 5 bins)

    raw_params = init_raw_params(k_params, F, H, O)
    prepared = prepare_params(raw_params)

    input_batch = jax.random.normal(k_x, (B, T, F), jnp.float32)
    time_to_event_batch = jax.random.randint(k_tte, (B,), 0, T).astype(jnp.float32)

    out = deephit_forward(prepared, input_batch, time_to_event_batch)
    out = jax.block_until_ready(out)
    out_f32 = out.astype(jnp.float32)

    ref = reference_forward(raw_params, input_batch, time_to_event_batch)
    assert out.shape == (B, O)
    # bf16 activations / MXU operands / output (f32 accumulation) vs pure-f32
    # reference -> loose tolerance
    assert jnp.allclose(out_f32, ref, atol=2e-2, rtol=2e-2), \
        float(jnp.max(jnp.abs(out_f32 - ref)))
    # approx reciprocal + bf16 output: rows sum to 1 within ~1e-2
    assert jnp.allclose(jnp.sum(out_f32, axis=-1), 1.0, atol=1e-2)

    print("KERNEL_OK")
</pallas_src>

<mosaic_0001>
module attributes {stable_mosaic.version = 11 : i64} {
  func.func @_deephit_kernel(%arg0: i32, %arg1: memref<8x16xbf16, #tpu.memory_space<vmem>>, %arg2: memref<16x32xbf16, #tpu.memory_space<vmem>>, %arg3: memref<1x32xf32, #tpu.memory_space<vmem>>, %arg4: memref<32x32xbf16, #tpu.memory_space<vmem>>, %arg5: memref<1x32xf32, #tpu.memory_space<vmem>>, %arg6: memref<32x32xbf16, #tpu.memory_space<vmem>>, %arg7: memref<16x32xbf16, #tpu.memory_space<vmem>>, %arg8: memref<1x32xf32, #tpu.memory_space<vmem>>, %arg9: memref<32x128xbf16, #tpu.memory_space<vmem>>, %arg10: memref<1x128xf32, #tpu.memory_space<vmem>>, %arg11: memref<8x128xbf16, #tpu.memory_space<vmem>>) attributes {dimension_semantics = [#tpu.dimension_semantics<parallel>], iteration_bounds = array<i64: 1>, scalar_prefetch = 0 : i64, scratch_operands = 0 : i64, tpu.core_type = #tpu.core_type<tc>, window_params = [{transform_indices = @transform_0, window_bounds = array<i64: 8, 16>}, {pipeline_mode = #tpu.pipeline_mode<synchronous>, transform_indices = @transform_1, window_bounds = array<i64: 16, 32>}, {pipeline_mode = #tpu.pipeline_mode<synchronous>, transform_indices = @transform_2, window_bounds = array<i64: 1, 32>}, {pipeline_mode = #tpu.pipeline_mode<synchronous>, transform_indices = @transform_3, window_bounds = array<i64: 32, 32>}, {pipeline_mode = #tpu.pipeline_mode<synchronous>, transform_indices = @transform_4, window_bounds = array<i64: 1, 32>}, {pipeline_mode = #tpu.pipeline_mode<synchronous>, transform_indices = @transform_5, window_bounds = array<i64: 32, 32>}, {pipeline_mode = #tpu.pipeline_mode<synchronous>, transform_indices = @transform_6, window_bounds = array<i64: 16, 32>}, {pipeline_mode = #tpu.pipeline_mode<synchronous>, transform_indices = @transform_7, window_bounds = array<i64: 1, 32>}, {pipeline_mode = #tpu.pipeline_mode<synchronous>, transform_indices = @transform_8, window_bounds = array<i64: 32, 128>}, {pipeline_mode = #tpu.pipeline_mode<synchronous>, transform_indices = @transform_9, window_bounds = array<i64: 1, 128>}, {transform_indices = @transform_10, window_bounds = array<i64: 8, 128>}]} {
    %c0 = arith.constant 0 : index
    %c0_0 = arith.constant 0 : index
    %0 = vector.load %arg1[%c0, %c0_0] : memref<8x16xbf16, #tpu.memory_space<vmem>>, vector<8x16xbf16>
    %c0_1 = arith.constant 0 : index
    %c0_2 = arith.constant 0 : index
    %1 = vector.load %arg2[%c0_1, %c0_2] : memref<16x32xbf16, #tpu.memory_space<vmem>>, vector<16x32xbf16>
    %cst = arith.constant dense<0.000000e+00> : vector<8x32xf32>
    %2 = tpu.matmul %0, %1, %cst {dimension_numbers = #tpu.dot_dimension_numbers<[1], [0], [0], [1], [0, 0, 1, 1], [], []>} : vector<8x16xbf16>, vector<16x32xbf16>, vector<8x32xf32> -> vector<8x32xf32>
    %c0_3 = arith.constant 0 : index
    %c0_4 = arith.constant 0 : index
    %3 = vector.load %arg3[%c0_3, %c0_4] : memref<1x32xf32, #tpu.memory_space<vmem>>, vector<1x32xf32>
    %4 = vector.broadcast %3 : vector<1x32xf32> to vector<8x32xf32>
    %5 = arith.addf %2, %4 : vector<8x32xf32>
    %cst_5 = arith.constant 0.000000e+00 : f32
    %6 = vector.broadcast %cst_5 : f32 to vector<8x32xf32>
    %7 = arith.maximumf %5, %6 : vector<8x32xf32>
    %8 = arith.truncf %7 : vector<8x32xf32> to vector<8x32xbf16>
    %c0_6 = arith.constant 0 : index
    %c0_7 = arith.constant 0 : index
    %9 = vector.load %arg4[%c0_6, %c0_7] : memref<32x32xbf16, #tpu.memory_space<vmem>>, vector<32x32xbf16>
    %cst_8 = arith.constant dense<0.000000e+00> : vector<8x32xf32>
    %10 = tpu.matmul %8, %9, %cst_8 {dimension_numbers = #tpu.dot_dimension_numbers<[1], [0], [0], [1], [0, 0, 1, 1], [], []>} : vector<8x32xbf16>, vector<32x32xbf16>, vector<8x32xf32> -> vector<8x32xf32>
    %c0_9 = arith.constant 0 : index
    %c0_10 = arith.constant 0 : index
    %11 = vector.load %arg5[%c0_9, %c0_10] : memref<1x32xf32, #tpu.memory_space<vmem>>, vector<1x32xf32>
    %12 = vector.broadcast %11 : vector<1x32xf32> to vector<8x32xf32>
    %13 = arith.addf %10, %12 : vector<8x32xf32>
    %cst_11 = arith.constant 0.000000e+00 : f32
    %14 = vector.broadcast %cst_11 : f32 to vector<8x32xf32>
    %15 = arith.maximumf %13, %14 : vector<8x32xf32>
    %16 = arith.truncf %15 : vector<8x32xf32> to vector<8x32xbf16>
    %c0_12 = arith.constant 0 : index
    %c0_13 = arith.constant 0 : index
    %17 = vector.load %arg6[%c0_12, %c0_13] : memref<32x32xbf16, #tpu.memory_space<vmem>>, vector<32x32xbf16>
    %cst_14 = arith.constant dense<0.000000e+00> : vector<8x32xf32>
    %18 = tpu.matmul %16, %17, %cst_14 {dimension_numbers = #tpu.dot_dimension_numbers<[1], [0], [0], [1], [0, 0, 1, 1], [], []>} : vector<8x32xbf16>, vector<32x32xbf16>, vector<8x32xf32> -> vector<8x32xf32>
    %c0_15 = arith.constant 0 : index
    %c0_16 = arith.constant 0 : index
    %19 = vector.load %arg7[%c0_15, %c0_16] : memref<16x32xbf16, #tpu.memory_space<vmem>>, vector<16x32xbf16>
    %cst_17 = arith.constant dense<0.000000e+00> : vector<8x32xf32>
    %20 = tpu.matmul %0, %19, %cst_17 {dimension_numbers = #tpu.dot_dimension_numbers<[1], [0], [0], [1], [0, 0, 1, 1], [], []>} : vector<8x16xbf16>, vector<16x32xbf16>, vector<8x32xf32> -> vector<8x32xf32>
    %21 = arith.addf %18, %20 : vector<8x32xf32>
    %c0_18 = arith.constant 0 : index
    %c0_19 = arith.constant 0 : index
    %22 = vector.load %arg8[%c0_18, %c0_19] : memref<1x32xf32, #tpu.memory_space<vmem>>, vector<1x32xf32>
    %23 = vector.broadcast %22 : vector<1x32xf32> to vector<8x32xf32>
    %24 = arith.addf %21, %23 : vector<8x32xf32>
    %cst_20 = arith.constant 0.000000e+00 : f32
    %25 = vector.broadcast %cst_20 : f32 to vector<8x32xf32>
    %26 = arith.maximumf %24, %25 : vector<8x32xf32>
    %27 = arith.truncf %26 : vector<8x32xf32> to vector<8x32xbf16>
    %c0_21 = arith.constant 0 : index
    %c0_22 = arith.constant 0 : index
    %28 = vector.load %arg9[%c0_21, %c0_22] : memref<32x128xbf16, #tpu.memory_space<vmem>>, vector<32x128xbf16>
    %cst_23 = arith.constant dense<0.000000e+00> : vector<8x128xf32>
    %29 = tpu.matmul %27, %28, %cst_23 {dimension_numbers = #tpu.dot_dimension_numbers<[1], [0], [0], [1], [0, 0, 1, 1], [], []>} : vector<8x32xbf16>, vector<32x128xbf16>, vector<8x128xf32> -> vector<8x128xf32>
    %c0_24 = arith.constant 0 : index
    %c0_25 = arith.constant 0 : index
    %30 = vector.load %arg10[%c0_24, %c0_25] : memref<1x128xf32, #tpu.memory_space<vmem>>, vector<1x128xf32>
    %31 = vector.broadcast %30 : vector<1x128xf32> to vector<8x128xf32>
    %32 = arith.addf %29, %31 : vector<8x128xf32>
    %cst_26 = arith.constant dense<0xFF800000> : vector<8xf32>
    %33 = vector.multi_reduction <maximumf>, %32, %cst_26 [1] : vector<8x128xf32> to vector<8xf32>
    %34 = vector.shape_cast %33 : vector<8xf32> to vector<8x1xf32>
    %35 = vector.broadcast %34 : vector<8x1xf32> to vector<8x128xf32>
    %36 = arith.subf %32, %35 : vector<8x128xf32>
    %37 = math.exp %36 : vector<8x128xf32>
    %cst_27 = arith.constant dense<0.000000e+00> : vector<8xf32>
    %38 = vector.multi_reduction <add>, %37, %cst_27 [1] : vector<8x128xf32> to vector<8xf32>
    %39 = vector.shape_cast %38 : vector<8xf32> to vector<8x1xf32>
    %40 = tpu.reciprocal %39 {approx = true} : vector<8x1xf32> -> vector<8x1xf32>
    %41 = vector.broadcast %40 : vector<8x1xf32> to vector<8x128xf32>
    %42 = arith.mulf %37, %41 : vector<8x128xf32>
    %43 = arith.truncf %42 : vector<8x128xf32> to vector<8x128xbf16>
    %c0_28 = arith.constant 0 : index
    %c0_29 = arith.constant 0 : index
    %44 = vector.load %arg11[%c0_28, %c0_29] : memref<8x128xbf16, #tpu.memory_space<vmem>>, vector<8x128xbf16>
    tpu.vector_store %arg11[%c0_28, %c0_29], %43 {strides = array<i32>} : memref<8x128xbf16, #tpu.memory_space<vmem>>, vector<8x128xbf16>,
    return
  }
  func.func @transform_0(%arg0: i32) -> (i32, i32) {
    %c0_i32 = arith.constant 0 : i32
    %c0_i32_0 = arith.constant 0 : i32
    return %arg0, %c0_i32 : i32, i32
  }
  func.func @transform_1(%arg0: i32) -> (i32, i32) {
    %c0_i32 = arith.constant 0 : i32
    %c0_i32_0 = arith.constant 0 : i32
    %c0_i32_1 = arith.constant 0 : i32
    return %c0_i32, %c0_i32_0 : i32, i32
  }
  func.func @transform_2(%arg0: i32) -> (i32, i32) {
    %c0_i32 = arith.constant 0 : i32
    %c0_i32_0 = arith.constant 0 : i32
    %c0_i32_1 = arith.constant 0 : i32
    return %c0_i32, %c0_i32_0 : i32, i32
  }
  func.func @transform_3(%arg0: i32) -> (i32, i32) {
    %c0_i32 = arith.constant 0 : i32
    %c0_i32_0 = arith.constant 0 : i32
    %c0_i32_1 = arith.constant 0 : i32
    return %c0_i32, %c0_i32_0 : i32, i32
  }
  func.func @transform_4(%arg0: i32) -> (i32, i32) {
    %c0_i32 = arith.constant 0 : i32
    %c0_i32_0 = arith.constant 0 : i32
    %c0_i32_1 = arith.constant 0 : i32
    return %c0_i32, %c0_i32_0 : i32, i32
  }
  func.func @transform_5(%arg0: i32) -> (i32, i32) {
    %c0_i32 = arith.constant 0 : i32
    %c0_i32_0 = arith.constant 0 : i32
    %c0_i32_1 = arith.constant 0 : i32
    return %c0_i32, %c0_i32_0 : i32, i32
  }
  func.func @transform_6(%arg0: i32) -> (i32, i32) {
    %c0_i32 = arith.constant 0 : i32
    %c0_i32_0 = arith.constant 0 : i32
    %c0_i32_1 = arith.constant 0 : i32
    return %c0_i32, %c0_i32_0 : i32, i32
  }
  func.func @transform_7(%arg0: i32) -> (i32, i32) {
    %c0_i32 = arith.constant 0 : i32
    %c0_i32_0 = arith.constant 0 : i32
    %c0_i32_1 = arith.constant 0 : i32
    return %c0_i32, %c0_i32_0 : i32, i32
  }
  func.func @transform_8(%arg0: i32) -> (i32, i32) {
    %c0_i32 = arith.constant 0 : i32
    %c0_i32_0 = arith.constant 0 : i32
    %c0_i32_1 = arith.constant 0 : i32
    return %c0_i32, %c0_i32_0 : i32, i32
  }
  func.func @transform_9(%arg0: i32) -> (i32, i32) {
    %c0_i32 = arith.constant 0 : i32
    %c0_i32_0 = arith.constant 0 : i32
    %c0_i32_1 = arith.constant 0 : i32
    return %c0_i32, %c0_i32_0 : i32, i32
  }
  func.func @transform_10(%arg0: i32) -> (i32, i32) {
    %c0_i32 = arith.constant 0 : i32
    %c0_i32_0 = arith.constant 0 : i32
    return %arg0, %c0_i32 : i32, i32
  }
}

</mosaic_0001>

<bundles_post_ra>
// kernel: tpu_custom_call.1
= control target key start
LH: loop header
LB: loop body
LE: loop exit
PB: predicated region body
PF: predicated region fallthrough
CT: control target
= control target key end

     0   :  { %15 = vsyncpa [#allocation3], 0  ;;  %s848_s0 = inlined_call_operand.hbm [shape: bf16[8,16], index: 0, kind: input, shape index: {}]   ;;  %s849_s1 = inlined_call_operand.hbm [shape: bf16[16,32], index: 1, kind: input, shape index: {}]   ;;  %s850_s2 = inlined_call_operand.vmem [shape: f32[1,32], index: 2, kind: input, shape index: {}]   ;;  %s851_s3 = inlined_call_operand.hbm [shape: bf16[32,32], index: 3, kind: input, shape index: {}]   ;;  %s852_s4 = inlined_call_operand.vmem [shape: f32[1,32], index: 4, kind: input, shape index: {}]   ;;  %s853_s5 = inlined_call_operand.vmem [shape: bf16[32,32], index: 5, kind: input, shape index: {}]   ;;  %s854_s6 = inlined_call_operand.hbm [shape: bf16[16,32], index: 6, kind: input, shape index: {}]   ;;  %s855_s7 = inlined_call_operand.vmem [shape: f32[1,32], index: 7, kind: input, shape index: {}]   ;;  %s856_s8 = inlined_call_operand.hbm [shape: bf16[32,128], index: 8, kind: input, shape index: {}]   ;;  %s857_s9 = inlined_call_operand.vmem [shape: f32[1,128], index: 9, kind: input, shape index: {}]   ;;  %s858_s10 = inlined_call_operand.hbm [shape: bf16[8,128], index: 10, kind: output, shape index: {}]  }
   0x1   :  { %16 = vsyncpa [#allocation6], 0 }
   0x2   :  { %17 = vsyncpa [#allocation9], 0 }
   0x3   :  { %18 = vsyncpa [#allocation4], 0  ;;  %s673_s13 = smov [#allocation5]   ;;  %s533_s17 = scalar_lea.hbm %s849_s1, 128 }
   0x4   :  { %s34_s14 = sshll.u32 %s673_s13, 4  ;;  %p534_p0 = scmp.ne.s32.totalorder %s849_s1, %s533_s17  ;;  %s35_s14 = int_to_ptr.vmem [resolvable:$true] %s34_s14 }
   0x5   :  { %p537_p1 = scmp.lt.u32.totalorder %s533_s17, %s849_s1 }
   0x7   :  { %p539_p2 = pnand %p537_p1, %p534_p0 }
   0x9   :  { %542 = shalt.err (!%p539_p2)
}
   0xa   :  { %s543_s22 = scalar_lea.vmem %s35_s14, 128  ;;  %p548_p4 = scmp.lt.s32.totalorder %s35_s14, %s35_s14 }
   0xb   :  { %p544_p3 = scmp.ne.s32.totalorder %s35_s14, %s543_s22  ;;  %p549_p5 = scmp.lt.s32.totalorder %s543_s22, %s543_s22 }
   0xd   :  { %p550_p6 = por %p549_p5, %p548_p4 }
   0xf   :  { %p551_p7 = pnand %p550_p6, %p544_p3 }
  0x11   :  { %554 = shalt.err (!%p551_p7)
}
  0x12   :  { %s674_s23 = smov 64   ;;  %s675_s24 = smov 4  }
  0x13   :  { %40 = dma.hbm_to_vmem [thread:$0]  %s849_s1, 128, %s35_s14, [#allocation6], %s674_s23, %s674_s23, %s675_s24  }
  0x14   :  { %s676_s27 = smov [#allocation8]   ;;  %s677_s29 = smov [#allocation2]  }
  0x15   :  { %s64_s28 = sshll.u32 %s676_s27, 4  ;;  %s25_s30 = sshll.u32 %s677_s29, 4  ;;  %s65_s28 = int_to_ptr.vmem [resolvable:$true] %s64_s28  ;;  %s26_s30 = int_to_ptr.vmem [resolvable:$true] %s25_s30 }
  0x16   :  { %s555_s13 = scalar_lea.hbm %s854_s6, 128 }
  0x17   :  { %p556_p8 = scmp.ne.s32.totalorder %s854_s6, %s555_s13  ;;  %p559_p9 = scmp.lt.u32.totalorder %s555_s13, %s854_s6 }
  0x19   :  { %p561_p10 = pnand %p559_p9, %p556_p8 }
  0x1b   :  { %564 = shalt.err (!%p561_p10)
}
  0x1c   :  { %s565_s1 = scalar_lea.vmem %s65_s28, 128  ;;  %p570_p12 = scmp.lt.s32.totalorder %s65_s28, %s65_s28 }
  0x1d   :  { %p566_p11 = scmp.ne.s32.totalorder %s65_s28, %s565_s1  ;;  %p571_p13 = scmp.lt.s32.totalorder %s565_s1, %s565_s1 }
  0x1f   :  { %p572_p0 = por %p571_p13, %p570_p12 }
  0x21   :  { %p573_p1 = pnand %p572_p0, %p566_p11 }
  0x23   :  { %576 = shalt.err (!%p573_p1)
}
  0x24   :  { %70 = dma.hbm_to_vmem [thread:$0]  %s854_s6, 128, %s65_s28, [#allocation9], %s674_s23, %s674_s23, %s675_s24  }
  0x25   :  { %s577_s22 = scalar_lea.hbm %s848_s0, 64 }
  0x26   :  { %p578_p2 = scmp.ne.s32.totalorder %s848_s0, %s577_s22  ;;  %p581_p3 = scmp.lt.u32.totalorder %s577_s22, %s848_s0 }
  0x28   :  { %p583_p4 = pnand %p581_p3, %p578_p2 }
  0x2a   :  { %586 = shalt.err (!%p583_p4)
}
  0x2b   :  { %s587_s11 = scalar_lea.vmem %s26_s30, 64  ;;  %p592_p6 = scmp.lt.s32.totalorder %s26_s30, %s26_s30 }
  0x2c   :  { %p588_p5 = scmp.ne.s32.totalorder %s26_s30, %s587_s11  ;;  %p593_p7 = scmp.lt.s32.totalorder %s587_s11, %s587_s11 }
  0x2e   :  { %p594_p8 = por %p593_p7, %p592_p6 }
  0x30   :  { %p595_p9 = pnand %p594_p8, %p588_p5 }
  0x32   :  { %598 = shalt.err (!%p595_p9)
}
  0x33   :  { %28 = dma.hbm_to_vmem [thread:$0]  %s848_s0, 64, %s26_s30, [#allocation3]  }
  0x34   :  { %s678_s12 = smov [#allocation7]   ;;  %s679_s15 = smov [#allocation10]  }
  0x35   :  { %s48_s13 = sshll.u32 %s678_s12, 4  ;;  %s78_s16 = sshll.u32 %s679_s15, 4  ;;  %s49_s13 = int_to_ptr.vmem [resolvable:$true] %s48_s13  ;;  %s79_s16 = int_to_ptr.vmem [resolvable:$true] %s78_s16 }
  0x36   :  { %s599_s1 = scalar_lea.hbm %s851_s3, 256 }
  0x37   :  { %p600_p10 = scmp.ne.s32.totalorder %s851_s3, %s599_s1  ;;  %p603_p11 = scmp.lt.u32.totalorder %s599_s1, %s851_s3 }
  0x39   :  { %p605_p12 = pnand %p603_p11, %p600_p10 }
  0x3b   :  { %608 = shalt.err (!%p605_p12)
}
  0x3c   :  { %s609_s0 = scalar_lea.vmem %s49_s13, 256  ;;  %p614_p0 = scmp.lt.s32.totalorder %s49_s13, %s49_s13 }
  0x3d   :  { %p610_p13 = scmp.ne.s32.totalorder %s49_s13, %s609_s0  ;;  %p615_p1 = scmp.lt.s32.totalorder %s609_s0, %s609_s0 }
  0x3f   :  { %p616_p2 = por %p615_p1, %p614_p0 }
  0x41   :  { %p617_p3 = pnand %p616_p2, %p610_p13 }
  0x43   :  { %620 = shalt.err (!%p617_p3)
}
  0x44   :  { %54 = dma.hbm_to_vmem [thread:$0]  %s851_s3, 256, %s49_s13, [#allocation6], %s674_s23, %s674_s23, %s675_s24  }
  0x45   :  { %s621_s27 = scalar_lea.hbm %s856_s8, 256 }
  0x46   :  { %p622_p4 = scmp.ne.s32.totalorder %s856_s8, %s621_s27  ;;  %p625_p5 = scmp.lt.u32.totalorder %s621_s27, %s856_s8 }
  0x48   :  { %p627_p6 = pnand %p625_p5, %p622_p4 }
  0x4a   :  { %630 = shalt.err (!%p627_p6)
}
  0x4b   :  { %s631_s12 = scalar_lea.vmem %s79_s16, 256  ;;  %p636_p8 = scmp.lt.s32.totalorder %s79_s16, %s79_s16 }
  0x4c   :  { %p632_p7 = scmp.ne.s32.totalorder %s79_s16, %s631_s12  ;;  %p637_p9 = scmp.lt.s32.totalorder %s631_s12, %s631_s12 }
  0x4e   :  { %p638_p10 = por %p637_p9, %p636_p8 }
  0x50   :  { %p639_p11 = pnand %p638_p10, %p632_p7 }
  0x52   :  { %642 = shalt.err (!%p639_p11)
}
  0x53   :  { %84 = dma.hbm_to_vmem [thread:$0]  %s856_s8, 256, %s79_s16, [#allocation9], %s674_s23, %s674_s23, %s675_s24  }
  0x54   :  { %665 = dma.done.wait [#allocation3], 64  }
  0x55   :  { %666 = vsyncadd [#allocation3], 4294967232 }
  0x56   :  { %667 = dma.done.wait [#allocation6], 384  }
  0x57   :  { %668 = vsyncadd [#allocation6], 4294966912 }
  0x58   :  { %669 = dma.done.wait [#allocation9], 384  }
  0x59   :  { %670 = vsyncadd [#allocation9], 4294966912  ;;  %v680_v0 = vmov 0.0   ;;  %vm681_vm0 = vmmov 0   ;;  %v521_v1 = vld [vmem:[#allocation5] sm:$0xff]   ;;  %vm119_vm1 = vcmask 130048  }
  0x5a   :  { %475 = vmatprep.subr.bf16.mxu0 %v680_v0  ;;  %477 = vmatprep.mubr.msk.bf16.mxu0 %vm681_vm0, %v680_v0  ;;  %v103_v2 = vld [vmem:[#allocation2] sm:$0xf]  ;;  %v522_v3 = vld [vmem:[#allocation7] sm:$0xff]   ;;  %v523_v4 = vld [vmem:[#allocation7 + $0x8] sm:$0xff]   ;;  %vm188_vm2 = vcmask 261120  }
  0x5b   :  { %481 = vmatprep.subr.bf16.mxu1 %v680_v0  ;;  %485 = vmatprep.mubr.msk.bf16.mxu1 %vm681_vm0, %v680_v0  ;;  %v524_v5 = vld [vmem:[#allocation8] sm:$0xff]   ;;  %v445_v6 = vld [vmem:[%s850_s2] ss:$0 sm:$0xff]  ;;  %v527_v28 = vld [vmem:[#allocation10] sm:$0xff]  }
  0x5c   :  { %476 = vmatpush3.bf16.msra.mxu0 %v521_v1  ;;  %482 = vmatpush3.bf16.msra.mxu1 %v522_v3  ;;  %v525_v13 = vld [vmem:[%s853_s5] sm:$0xff]   ;;  %v526_v15 = vld [vmem:[%s853_s5 + $0x8] sm:$0xff]  }
  0x5d   :  { %489 = vmatprep.subr.bf16.mxu0 %v680_v0  ;;  %483 = vmatprep.subr.bf16.mxu1 %v680_v0  ;;  %v448_v20 = vld [vmem:[%s852_s4] ss:$0 sm:$0xff] }
  0x5e   :  { %v528_v29 = vld [vmem:[#allocation10 + $0x8] sm:$0xff]  }
  0x5f   :  { %478 = vmatmul.mubr.msk.bf16.vlgmr.msra.gmra.mrb[0].mxu0 %vm119_vm1, %v103_v2  ;;  %v457_v31 = vld [vmem:[%s855_s7] ss:$0 sm:$0xff]  ;;  %s682_s7 = smov [#allocation11]  }
  0x60   :  { %491 = vmatprep.mubr.msk.bf16.mxu0 %vm681_vm0, %v680_v0  ;;  %484 = vmatpush3.bf16.msra.mxu1 %v523_v4  ;;  %v458_v39 = vld [vmem:[%s857_s9] ss:$0 sm:$0xff]  ;;  %s434_s19 = sshll.u32 %s682_s7, 4  ;;  %s435_s19 = int_to_ptr.vmem [resolvable:$true] %s434_s19 }
  0x61   :  { %495 = vmatprep.subr.bf16.mxu1 %v680_v0  ;;  %490 = vmatpush3.bf16.msra.mxu0 %v524_v5  ;;  %s643_s9 = scalar_lea.vmem %s435_s19, 64  ;;  %p648_p13 = scmp.lt.s32.totalorder %s435_s19, %s435_s19 }
  0x62   :  { %503 = vmatprep.subr.bf16.mxu0 %v680_v0  ;;  %p644_p12 = scmp.ne.s32.totalorder %s435_s19, %s643_s9  ;;  %p649_p0 = scmp.lt.s32.totalorder %s643_s9, %s643_s9 }
  0x64   :  { %p650_p1 = por %p649_p0, %p648_p13 }
  0x66   :  { %p651_p2 = pnand %p650_p1, %p644_p12 }
  0x67   :  { %492 = vmatmul.mubr.msk.bf16.vlgmr.msra.gmra.mrb[4].mxu0 %vm119_vm1, %v103_v2 }
  0x68   :  { %507 = vmatprep.mubr.msk.bf16.mxu0 %vm681_vm0, %v680_v0  ;;  %504 = vmatpush3.bf16.msra.mxu0 %v527_v28 }
  0x69   :  { %505 = vmatprep.subr.bf16.mxu0 %v680_v0 }
  0x6c   :  { %506 = vmatpush3.bf16.msra.mxu0 %v528_v29 }
 0x132   :  { %v157_v7 = vpop.f32.mrb[0].mxu0 }
 0x133   :  { %v158_v8 = vadd.f32 %v445_v6, %v157_v7  ;;  %v479_v9 = vpop.f32.mrb[1].mxu0 }
 0x134   :  { %v160_v10 = vpop.f32.mrb[2].mxu0 }
 0x135   :  { %v163_v11 = vmax.f32 %v158_v8, 0.0  ;;  %v480_v12 = vpop.f32.mrb[3].mxu0 }
 0x137   :  { %v164_v14 = vpack.c.bf16 %v163_v11, %v163_v11 }
 0x139   :  { %486 = vmatmul.mubr.msk.bf16.vlgmr.msra.gmra.mrb[0].mxu1 %vm188_vm2, %v164_v14 }
 0x13a   :  { %496 = vmatpush3.bf16.msra.mxu1 %v525_v13  ;;  %499 = vmatprep.mubr.msk.bf16.mxu1 %vm681_vm0, %v680_v0  ;;  %v280_v16 = vpop.f32.mrb[4].mxu0 }
 0x13b   :  { %497 = vmatprep.subr.bf16.mxu1 %v680_v0  ;;  %v493_v17 = vpop.f32.mrb[5].mxu0 }
 0x13c   :  { %v283_v18 = vpop.f32.mrb[6].mxu0 }
 0x13d   :  { %v494_v19 = vpop.f32.mrb[7].mxu0 }
 0x13e   :  { %498 = vmatpush3.bf16.msra.mxu1 %v526_v15 }
 0x20c   :  { %v226_v21 = vpop.f32.mrb[0].mxu1 }
 0x20d   :  { %v227_v22 = vadd.f32 %v448_v20, %v226_v21  ;;  %v487_v23 = vpop.f32.mrb[1].mxu1 }
 0x20e   :  { %v229_v24 = vpop.f32.mrb[2].mxu1 }
 0x20f   :  { %v232_v25 = vmax.f32 %v227_v22, 0.0  ;;  %v488_v26 = vpop.f32.mrb[3].mxu1 }
 0x211   :  { %v233_v27 = vpack.c.bf16 %v232_v25, %v232_v25 }
 0x213   :  { %500 = vmatmul.mubr.msk.bf16.vlgmr.msra.gmra.mrb[4].mxu1 %vm188_vm2, %v233_v27 }
 0x2e6   :  { %v335_v30 = vpop.f32.mrb[4].mxu1 }
 0x2e7   :  { %v336_v32 = vadd.f32 %v335_v30, %v280_v16  ;;  %v501_v33 = vpop.f32.mrb[5].mxu1 }
 0x2e8   :  { %v338_v34 = vpop.f32.mrb[6].mxu1 }
 0x2e9   :  { %v348_v35 = vadd.f32 %v457_v31, %v336_v32  ;;  %v502_v36 = vpop.f32.mrb[7].mxu1 }
 0x2eb   :  { %v349_v37 = vmax.f32 %v348_v35, 0.0 }
 0x2ed   :  { %v350_v38 = vpack.c.bf16 %v349_v37, %v349_v37 }
 0x2ef   :  { %508 = vmatmul.mubr.msk.bf16.vlgmr.msra.gmra.mrb[8].mxu0 %vm188_vm2, %v350_v38 }
 0x3c2   :  { %v411_v40 = vpop.f32.mrb[8].mxu0 }
 0x3c3   :  { %v412_v41 = vadd.f32 %v458_v39, %v411_v40  ;;  %v509_v42 = vpop.f32.mrb[9].mxu0 }
 0x3c4   :  { %v414_v43 = vpop.f32.mrb[10].mxu0 }
 0x3c5   :  { %417 = vmax.xlane.f32.xlu0 %v412_v41  ;;  %v510_v44 = vpop.f32.mrb[11].mxu0 }
 0x452   :  { %v418_v45 = vpop.xlane.xlu0 %417 }
 0x453   :  { %v419_v46 = vsub.f32 %v412_v41, %v418_v45 }
 0x455   :  { %v420_v47 = vmul.f32 1.442695, %v419_v46 }
 0x457   :  { %529 = vpow2.f32 %v420_v47 }
 0x461   :  { %v530_v48 = vpop.eup %529 }
 0x462   :  { %422 = vadd.xlane.f32.xlu0 %v530_v48 }
 0x4ef   :  { %v423_v49 = vpop.xlane.xlu0 %422 }
 0x4f0   :  { %531 = vrcp.f32 %v423_v49 }
 0x4fa   :  { %v532_v50 = vpop.eup %531 }
 0x4fb   :  { %v425_v51 = vmul.f32 %v532_v50, %v530_v48 }
 0x4fd   :  { %v426_v52 = vpack.c.bf16 %v425_v51, %v425_v51 }
 0x4ff   :  { %427 = vst [vmem:[#allocation11] sm:$0xf] %v426_v52 }
 0x500   :  { %654 = shalt.err (!%p651_p2)
}
 0x501   :  { %s655_s0 = scalar_lea.hbm %s858_s10, 64 }
 0x502   :  { %p656_p3 = scmp.ne.s32.totalorder %s858_s10, %s655_s0  ;;  %p659_p4 = scmp.lt.u32.totalorder %s655_s0, %s858_s10 }
 0x504   :  { %p661_p5 = pnand %p659_p4, %p656_p3 }
 0x506   :  { %664 = shalt.err (!%p661_p5)
}
 0x507   :  { %437 = dma.vmem_to_hbm [thread:$0]  %s435_s19, 64, %s858_s10, [#allocation4]  }
 0x508   :  { %671 = dma.done.wait [#allocation4], 64  }
 0x509   :  { %672 = vsyncadd [#allocation4], 4294967232 }
 0x50a   :  { %441 = vsyncpa [#allocation3], 1 }
 0x50b   :  { %442 = vsyncpa [#allocation6], 1 }
 0x50c   :  { %443 = vsyncpa [#allocation9], 1 }
 0x50d   :  { %444 = vsyncpa [#allocation4], 1 }

</bundles_post_ra>
